<compile_context>
chip_gen: v7x
topology: tpu7x:2x2x1
jax: 0.10.0
libtpu: 0.0.40
codegen_flags: <defaults>
</compile_context>

<pallas_src>
import jax
import jax.numpy as jnp
import numpy as np
from jax.experimental import pallas as pl
from jax.experimental.pallas import tpu as pltpu

NEG_SLOPE = 0.01   # nn.LeakyReLU default
BN_EPS = 1e-5      # nn.BatchNorm1d default

LANE = 128                        # TPU vreg lane width
_VMEM_TILE_BUDGET = 40 * 2**20    # raw tile budget: fits v7x's 64 MiB/TC w/ headroom
_VMEM_LIMIT_CAP = 56 * 2**20      # never request more scoped VMEM than this


def linear_fused_kernel(x_ref, w1_ref, b1_ref, w2_ref, b2_ref, out_ref):
    # firstLinear: (Bt, D) @ (D, H) on the MXU, f32 accumulation.
    h = jnp.dot(x_ref[...], w1_ref[...], preferred_element_type=jnp.float32)
    h = h + b1_ref[...]                               # (Bt, H) f32

    # LeakyReLU
    h = jnp.where(h > 0, h, NEG_SLOPE * h)

    # BatchNorm1d (eval / running stats) is folded into w2/b2 at trace time.
    # finalLinear: (Bt, H) @ (H, OP). OP = out_size zero-padded to a 128-lane
    # multiple, so the output store below is full-width (no masked vst.msk).
    o = jnp.dot(h.astype(w2_ref.dtype), w2_ref[...],
                preferred_element_type=jnp.float32)
    out_ref[...] = (o + b2_ref[...]).astype(out_ref.dtype)


def _vmem_bytes(bt, D, H, OP, mm_bytes):
    # BlockSpec double-buffers every operand (including grid-invariant weights).
    return (2 * bt * D * mm_bytes       # x tile
            + 2 * D * H * mm_bytes      # firstLinear weight^T (resident)
            + 2 * H * 4                 # firstLinear bias (f32)
            + 2 * H * OP * mm_bytes     # finalLinear weight^T (BN-folded, padded)
            + 2 * OP * 4                # finalLinear bias (folded, padded, f32)
            + 2 * bt * OP * 4)          # output tile (f32)


def linear_forward(inputs, params, *, block_b=512, matmul_dtype=jnp.bfloat16):
    """inputs: list of (B, d_i) arrays (the module's `out` list).
    Returns (B,) if out_size == 1 (matching .squeeze(-1)), else (B, out_size)."""
    W1, b1, gamma, beta, mean, var, W2, b2 = params

    # torch.cat(out, -1); the cast to the MXU operand dtype is folded into this
    # single pass over x (no separate astype / pad passes over the batch).
    x = jnp.concatenate([a.astype(matmul_dtype) for a in inputs], axis=-1)
    B, D = x.shape
    H = W1.shape[0]
    O = W2.shape[0]
    OP = LANE * max(1, pl.cdiv(O, LANE))           # lane-dense output width
    mm_bytes = np.dtype(matmul_dtype).itemsize

    # --- Fold BatchNorm1d (running stats) into finalLinear at trace time ---
    # BN(h) = h*s + t  with  s = gamma/sqrt(var+eps), t = beta - mean*s
    # finalLinear(BN(h)) = h @ (diag(s) @ W2^T) + (t @ W2^T + b2)
    s = gamma.astype(jnp.float32) * jax.lax.rsqrt(var.astype(jnp.float32) + BN_EPS)
    t = beta.astype(jnp.float32) - mean.astype(jnp.float32) * s

    w1t = jnp.transpose(W1).astype(matmul_dtype)                        # (D, H)
    b1r = b1.reshape(1, H).astype(jnp.float32)                          # (1, H)
    w2f = s[:, None] * jnp.transpose(W2).astype(jnp.float32)            # (H, O)
    b2f = b2.astype(jnp.float32) + t @ jnp.transpose(W2).astype(jnp.float32)
    # Zero-pad the (tiny) output dim to a full 128-lane multiple (lane-dense store).
    w2f = jnp.pad(w2f, ((0, 0), (0, OP - O))).astype(matmul_dtype)      # (H, OP)
    b2f = jnp.pad(b2f, (0, OP - O)).reshape(1, OP)                      # (1, OP)

    # --- Batch tiling ---
    if B <= 128:
        bt = B                                      # whole batch in one tile
    else:
        # >=2 grid steps so ("parallel",) can shard across v7x's 2 TensorCores;
        # 256-multiples match the v6e/v7x 2x256^2 MXU (128-multiples for v5e).
        unit = 256 if B >= 512 else 128
        bt = max(unit, min(block_b, unit * (B // unit)))
        while bt > unit and _vmem_bytes(bt, D, H, OP, mm_bytes) > _VMEM_TILE_BUDGET:
            bt -= unit
    # TODO(synk): if the resident weights alone blow the budget (very large D/H),
    # add grid axes tiling H (and D as an 'arbitrary' reduction with a VMEM
    # accumulator) instead of full-weight residency.

    # Last tile may be ragged: Pallas pads the reads and drops out-of-range
    # output rows on writeback (rows are independent), so no wrapper jnp.pad.
    grid_b = pl.cdiv(B, bt)

    est = _vmem_bytes(bt, D, H, OP, mm_bytes)
    vmem_limit = int(min(_VMEM_LIMIT_CAP, max(32 * 2**20, 2 * est)))

    full = lambda shape: pl.BlockSpec(shape, lambda i: (0,) * len(shape))

    out = pl.pallas_call(
        linear_fused_kernel,
        out_shape=jax.ShapeDtypeStruct((B, OP), jnp.float32),
        grid_spec=pltpu.PrefetchScalarGridSpec(
            num_scalar_prefetch=0,
            grid=(grid_b,),
            in_specs=[
                pl.BlockSpec((bt, D), lambda i: (i, 0)),   # x rows for this tile
                full((D, H)),                              # firstLinear weight^T
                full((1, H)),                              # firstLinear bias
                full((H, OP)),                             # finalLinear weight^T (BN-folded)
                full((1, OP)),                             # finalLinear bias (BN-folded)
            ],
            out_specs=pl.BlockSpec((bt, OP), lambda i: (i, 0)),
        ),
        compiler_params=pltpu.CompilerParams(
            dimension_semantics=("parallel",),
            vmem_limit_bytes=vmem_limit),
    )(x, w1t, b1r, w2f, b2f)

    out = out[:, :O]                                 # drop the lane padding
    return jnp.squeeze(out, -1) if O == 1 else out


def reference_forward(inputs, params):
    """Pure-JAX reference mirroring the PyTorch forward (eval mode)."""
    W1, b1, gamma, beta, mean, var, W2, b2 = params
    x = jnp.concatenate(inputs, axis=-1)
    h = x @ W1.T + b1
    h = jnp.where(h > 0, h, NEG_SLOPE * h)
    h = (h - mean) * jax.lax.rsqrt(var + BN_EPS) * gamma + beta
    o = h @ W2.T + b2
    return jnp.squeeze(o, -1) if o.shape[-1] == 1 else o


def init_params(key, input_size_all, hidden, out_size):
    """Deterministic parameter init matching the module's shapes (torch-like)."""
    D = sum(input_size_all)
    ks = jax.random.split(key, 8)
    lim1 = 1.0 / float(np.sqrt(D))
    W1 = jax.random.uniform(ks[0], (hidden, D), minval=-lim1, maxval=lim1,
                            dtype=jnp.float32)
    b1 = jax.random.uniform(ks[1], (hidden,), minval=-lim1, maxval=lim1,
                            dtype=jnp.float32)
    gamma = jax.random.uniform(ks[2], (hidden,), minval=0.8, maxval=1.2,
                               dtype=jnp.float32)
    beta = 0.05 * jax.random.normal(ks[3], (hidden,), dtype=jnp.float32)
    mean = 0.1 * jax.random.normal(ks[4], (hidden,), dtype=jnp.float32)
    var = jax.random.uniform(ks[5], (hidden,), minval=0.5, maxval=1.5,
                             dtype=jnp.float32)
    lim2 = 1.0 / float(np.sqrt(hidden))
    W2 = jax.random.uniform(ks[6], (out_size, hidden), minval=-lim2, maxval=lim2,
                            dtype=jnp.float32)
    b2 = jax.random.uniform(ks[7], (out_size,), minval=-lim2, maxval=lim2,
                            dtype=jnp.float32)
    return (W1, b1, gamma, beta, mean, var, W2, b2)


def _check(out, ref, tol, tag):
    err = float(jnp.max(jnp.abs(out - ref)))
    assert err < tol, f"{tag}: max abs err {err} >= tol {tol}"


if __name__ == "__main__":
    root = jax.random.PRNGKey(0)
    k_small, k_big = jax.random.split(root)

    # --- small config: single grid step, O=1 lane-padded to 128 ---
    input_size_all = (4, 6, 6)        # D = 16
    hidden, out_size, B = 32, 1, 8
    kp, *kx = jax.random.split(k_small, 1 + len(input_size_all))
    params = init_params(kp, input_size_all, hidden, out_size)
    inputs = [jax.random.normal(k, (B, d), dtype=jnp.float32)
              for k, d in zip(kx, input_size_all)]
    ref = jax.block_until_ready(reference_forward(inputs, params))

    # f32 MXU path -> tight check (bit-accurate-ish vs reference)
    out_f32 = jax.block_until_ready(
        linear_forward(inputs, params, matmul_dtype=jnp.float32))
    assert out_f32.shape == ref.shape == (B,)
    _check(out_f32, ref, 1e-4, "small/f32")

    # default bf16 MXU-operand path -> loosened tolerance
    out_bf16 = jax.block_until_ready(linear_forward(inputs, params))
    _check(out_bf16, ref, 5e-2 * (1.0 + float(jnp.max(jnp.abs(ref)))), "small/bf16")

    # --- larger config: batch-tiled (>=2 grid steps), ragged tail, O=8 -> 128 ---
    sizes2, hidden2, out2, B2 = (64, 64, 64), 256, 8, 300
    kp2, *kx2 = jax.random.split(k_big, 1 + len(sizes2))
    params2 = init_params(kp2, sizes2, hidden2, out2)
    inputs2 = [jax.random.normal(k, (B2, d), dtype=jnp.float32)
               for k, d in zip(kx2, sizes2)]
    ref2 = jax.block_until_ready(reference_forward(inputs2, params2))

    out2_f32 = jax.block_until_ready(
        linear_forward(inputs2, params2, matmul_dtype=jnp.float32))
    assert out2_f32.shape == ref2.shape == (B2, out2)
    _check(out2_f32, ref2, 1e-3, "big/f32")

    out2_bf16 = jax.block_until_ready(linear_forward(inputs2, params2))
    _check(out2_bf16, ref2, 5e-2 * (1.0 + float(jnp.max(jnp.abs(ref2)))), "big/bf16")

    print("KERNEL_OK")
</pallas_src>

<mosaic_0001>
module attributes {stable_mosaic.version = 11 : i64} {
  func.func @linear_fused_kernel(%arg0: i32, %arg1: memref<8x16xf32, #tpu.memory_space<vmem>>, %arg2: memref<16x32xf32, #tpu.memory_space<vmem>>, %arg3: memref<1x32xf32, #tpu.memory_space<vmem>>, %arg4: memref<32x128xf32, #tpu.memory_space<vmem>>, %arg5: memref<1x128xf32, #tpu.memory_space<vmem>>, %arg6: memref<8x128xf32, #tpu.memory_space<vmem>>) attributes {dimension_semantics = [#tpu.dimension_semantics<parallel>], iteration_bounds = array<i64: 1>, scalar_prefetch = 0 : i64, scratch_operands = 0 : i64, tpu.core_type = #tpu.core_type<tc>, window_params = [{transform_indices = @transform_0, window_bounds = array<i64: 8, 16>}, {pipeline_mode = #tpu.pipeline_mode<synchronous>, transform_indices = @transform_1, window_bounds = array<i64: 16, 32>}, {pipeline_mode = #tpu.pipeline_mode<synchronous>, transform_indices = @transform_2, window_bounds = array<i64: 1, 32>}, {pipeline_mode = #tpu.pipeline_mode<synchronous>, transform_indices = @transform_3, window_bounds = array<i64: 32, 128>}, {pipeline_mode = #tpu.pipeline_mode<synchronous>, transform_indices = @transform_4, window_bounds = array<i64: 1, 128>}, {transform_indices = @transform_5, window_bounds = array<i64: 8, 128>}]} {
    %c0 = arith.constant 0 : index
    %c0_0 = arith.constant 0 : index
    %0 = vector.load %arg1[%c0, %c0_0] : memref<8x16xf32, #tpu.memory_space<vmem>>, vector<8x16xf32>
    %c0_1 = arith.constant 0 : index
    %c0_2 = arith.constant 0 : index
    %1 = vector.load %arg2[%c0_1, %c0_2] : memref<16x32xf32, #tpu.memory_space<vmem>>, vector<16x32xf32>
    %cst = arith.constant dense<0.000000e+00> : vector<8x32xf32>
    %2 = tpu.matmul %0, %1, %cst {dimension_numbers = #tpu.dot_dimension_numbers<[1], [0], [0], [1], [0, 0, 1, 1], [], []>} : vector<8x16xf32>, vector<16x32xf32>, vector<8x32xf32> -> vector<8x32xf32>
    %c0_3 = arith.constant 0 : index
    %c0_4 = arith.constant 0 : index
    %3 = vector.load %arg3[%c0_3, %c0_4] : memref<1x32xf32, #tpu.memory_space<vmem>>, vector<1x32xf32>
    %4 = vector.broadcast %3 : vector<1x32xf32> to vector<8x32xf32>
    %5 = arith.addf %2, %4 : vector<8x32xf32>
    %cst_5 = arith.constant 0.000000e+00 : f32
    %6 = vector.broadcast %cst_5 : f32 to vector<8x32xf32>
    %7 = arith.cmpf ogt, %5, %6 : vector<8x32xf32>
    %cst_6 = arith.constant 0.00999999977 : f32
    %8 = vector.broadcast %cst_6 : f32 to vector<8x32xf32>
    %9 = arith.mulf %8, %5 : vector<8x32xf32>
    %10 = arith.select %7, %5, %9 : vector<8x32xi1>, vector<8x32xf32>
    %c0_7 = arith.constant 0 : index
    %c0_8 = arith.constant 0 : index
    %11 = vector.load %arg4[%c0_7, %c0_8] : memref<32x128xf32, #tpu.memory_space<vmem>>, vector<32x128xf32>
    %cst_9 = arith.constant dense<0.000000e+00> : vector<8x128xf32>
    %12 = tpu.matmul %10, %11, %cst_9 {dimension_numbers = #tpu.dot_dimension_numbers<[1], [0], [0], [1], [0, 0, 1, 1], [], []>} : vector<8x32xf32>, vector<32x128xf32>, vector<8x128xf32> -> vector<8x128xf32>
    %c0_10 = arith.constant 0 : index
    %c0_11 = arith.constant 0 : index
    %13 = vector.load %arg5[%c0_10, %c0_11] : memref<1x128xf32, #tpu.memory_space<vmem>>, vector<1x128xf32>
    %14 = vector.broadcast %13 : vector<1x128xf32> to vector<8x128xf32>
    %15 = arith.addf %12, %14 : vector<8x128xf32>
    %c0_12 = arith.constant 0 : index
    %c0_13 = arith.constant 0 : index
    %16 = vector.load %arg6[%c0_12, %c0_13] : memref<8x128xf32, #tpu.memory_space<vmem>>, vector<8x128xf32>
    tpu.vector_store %arg6[%c0_12, %c0_13], %15 {strides = array<i32>} : memref<8x128xf32, #tpu.memory_space<vmem>>, vector<8x128xf32>,
    return
  }
  func.func @transform_0(%arg0: i32) -> (i32, i32) {
    %c0_i32 = arith.constant 0 : i32
    %c0_i32_0 = arith.constant 0 : i32
    return %arg0, %c0_i32 : i32, i32
  }
  func.func @transform_1(%arg0: i32) -> (i32, i32) {
    %c0_i32 = arith.constant 0 : i32
    %c0_i32_0 = arith.constant 0 : i32
    %c0_i32_1 = arith.constant 0 : i32
    return %c0_i32, %c0_i32_0 : i32, i32
  }
  func.func @transform_2(%arg0: i32) -> (i32, i32) {
    %c0_i32 = arith.constant 0 : i32
    %c0_i32_0 = arith.constant 0 : i32
    %c0_i32_1 = arith.constant 0 : i32
    return %c0_i32, %c0_i32_0 : i32, i32
  }
  func.func @transform_3(%arg0: i32) -> (i32, i32) {
    %c0_i32 = arith.constant 0 : i32
    %c0_i32_0 = arith.constant 0 : i32
    %c0_i32_1 = arith.constant 0 : i32
    return %c0_i32, %c0_i32_0 : i32, i32
  }
  func.func @transform_4(%arg0: i32) -> (i32, i32) {
    %c0_i32 = arith.constant 0 : i32
    %c0_i32_0 = arith.constant 0 : i32
    %c0_i32_1 = arith.constant 0 : i32
    return %c0_i32, %c0_i32_0 : i32, i32
  }
  func.func @transform_5(%arg0: i32) -> (i32, i32) {
    %c0_i32 = arith.constant 0 : i32
    %c0_i32_0 = arith.constant 0 : i32
    return %arg0, %c0_i32 : i32, i32
  }
}

</mosaic_0001>

<bundles_post_ra>
// kernel: tpu_custom_call.1
= control target key start
LH: loop header
LB: loop body
LE: loop exit
PB: predicated region body
PF: predicated region fallthrough
CT: control target
= control target key end

     0   :  { %10 = vsyncpa [#allocation3], 0  ;;  %s490_s0 = inlined_call_operand.hbm [shape: f32[8,16], index: 0, kind: input, shape index: {}]   ;;  %s491_s1 = inlined_call_operand.hbm [shape: f32[16,32], index: 1, kind: input, shape index: {}]   ;;  %s492_s2 = inlined_call_operand.vmem [shape: f32[1,32], index: 2, kind: input, shape index: {}]   ;;  %s493_s3 = inlined_call_operand.hbm [shape: f32[32,128], index: 3, kind: input, shape index: {}]   ;;  %s494_s4 = inlined_call_operand.vmem [shape: f32[1,128], index: 4, kind: input, shape index: {}]   ;;  %s495_s5 = inlined_call_operand.hbm [shape: f32[8,128], index: 5, kind: output, shape index: {}]  }
   0x1   :  { %11 = vsyncpa [#allocation6], 0 }
   0x2   :  { %12 = vsyncpa [#allocation4], 0  ;;  %s391_s18 = smov [#allocation5]   ;;  %s297_s22 = scalar_lea.hbm %s491_s1, 256 }
   0x3   :  { %s28_s19 = sshll.u32 %s391_s18, 4  ;;  %p298_p0 = scmp.ne.s32.totalorder %s491_s1, %s297_s22  ;;  %s29_s19 = int_to_ptr.vmem [resolvable:$true] %s28_s19 }
   0x4   :  { %p301_p1 = scmp.lt.u32.totalorder %s297_s22, %s491_s1 }
   0x6   :  { %p303_p2 = pnand %p301_p1, %p298_p0 }
   0x8   :  { %306 = shalt.err (!%p303_p2)
}
   0x9   :  { %s307_s27 = scalar_lea.vmem %s29_s19, 256  ;;  %p312_p4 = scmp.lt.s32.totalorder %s29_s19, %s29_s19 }
   0xa   :  { %p308_p3 = scmp.ne.s32.totalorder %s29_s19, %s307_s27  ;;  %p313_p5 = scmp.lt.s32.totalorder %s307_s27, %s307_s27 }
   0xc   :  { %p314_p6 = por %p313_p5, %p312_p4 }
   0xe   :  { %p315_p7 = pnand %p314_p6, %p308_p3 }
  0x10   :  { %318 = shalt.err (!%p315_p7)
}
  0x11   :  { %s392_s28 = smov 128   ;;  %s393_s29 = smov 8  }
  0x12   :  { %34 = dma.hbm_to_vmem [thread:$0]  %s491_s1, 256, %s29_s19, [#allocation6], %s392_s28, %s392_s28, %s393_s29  }
  0x13   :  { %s394_s7 = smov [#allocation2]   ;;  %s395_s9 = smov [#allocation7]  }
  0x14   :  { %s19_s8 = sshll.u32 %s394_s7, 4  ;;  %s42_s10 = sshll.u32 %s395_s9, 4  ;;  %s20_s8 = int_to_ptr.vmem [resolvable:$true] %s19_s8  ;;  %s43_s10 = int_to_ptr.vmem [resolvable:$true] %s42_s10 }
  0x15   :  { %s319_s13 = scalar_lea.hbm %s490_s0, 128 }
  0x16   :  { %p320_p8 = scmp.ne.s32.totalorder %s490_s0, %s319_s13  ;;  %p323_p9 = scmp.lt.u32.totalorder %s319_s13, %s490_s0 }
  0x18   :  { %p325_p10 = pnand %p323_p9, %p320_p8 }
  0x1a   :  { %328 = shalt.err (!%p325_p10)
}
  0x1b   :  { %s329_s1 = scalar_lea.vmem %s20_s8, 128  ;;  %p334_p12 = scmp.lt.s32.totalorder %s20_s8, %s20_s8 }
  0x1c   :  { %p330_p11 = scmp.ne.s32.totalorder %s20_s8, %s329_s1  ;;  %p335_p13 = scmp.lt.s32.totalorder %s329_s1, %s329_s1 }
  0x1e   :  { %p336_p0 = por %p335_p13, %p334_p12 }
  0x20   :  { %p337_p1 = pnand %p336_p0, %p330_p11 }
  0x22   :  { %340 = shalt.err (!%p337_p1)
}
  0x23   :  { %22 = dma.hbm_to_vmem [thread:$0]  %s490_s0, 128, %s20_s8, [#allocation3]  }
  0x24   :  { %s341_s22 = scalar_lea.hbm %s493_s3, 512 }
  0x25   :  { %p342_p2 = scmp.ne.s32.totalorder %s493_s3, %s341_s22  ;;  %p345_p3 = scmp.lt.u32.totalorder %s341_s22, %s493_s3 }
  0x27   :  { %p347_p4 = pnand %p345_p3, %p342_p2 }
  0x29   :  { %350 = shalt.err (!%p347_p4)
}
  0x2a   :  { %s351_s27 = scalar_lea.vmem %s43_s10, 512  ;;  %p356_p6 = scmp.lt.s32.totalorder %s43_s10, %s43_s10 }
  0x2b   :  { %p352_p5 = scmp.ne.s32.totalorder %s43_s10, %s351_s27  ;;  %p357_p7 = scmp.lt.s32.totalorder %s351_s27, %s351_s27 }
  0x2d   :  { %p358_p8 = por %p357_p7, %p356_p6 }
  0x2f   :  { %p359_p9 = pnand %p358_p8, %p352_p5 }
  0x31   :  { %362 = shalt.err (!%p359_p9)
}
  0x32   :  { %48 = dma.hbm_to_vmem [thread:$0]  %s493_s3, 512, %s43_s10, [#allocation6], %s392_s28, %s392_s28, %s393_s29  }
  0x33   :  { %385 = dma.done.wait [#allocation3], 128  }
  0x34   :  { %386 = vsyncadd [#allocation3], 4294967168 }
  0x35   :  { %387 = dma.done.wait [#allocation6], 768  }
  0x36   :  { %388 = vsyncadd [#allocation6], 4294966528  ;;  %v396_v0 = vmov 0.0|0.0   ;;  %vm397_vm0 = vmmov 0   ;;  %v398_v1 = vmov 0.0   ;;  %v61_v2 = vld [vmem:[#allocation5] sm:$0xff] }
  0x37   :  { %279 = vmatprep.subr.bf16.mxu0 %v396_v0  ;;  %265 = vmatprep.mubr.msk.f32.mxu0 %vm397_vm0, %v398_v1  ;;  %v62_v3 = vld [vmem:[#allocation5 + $0x8] sm:$0xff]  ;;  %v147_v5 = vld [vmem:[#allocation7] sm:$0xff]  ;;  %v148_v6 = vld [vmem:[#allocation7 + $0x8] sm:$0xff]  ;;  %vm70_vm1 = vcmask 130048   ;;  %vm158_vm3 = vcmask 261120   ;;  %s399_s7 = smov [#allocation8]  }
  0x38   :  { %282 = vmatprep.subr.bf16.mxu1 %v396_v0  ;;  %276 = vmatprep.mubr.msk.f32.mxu1 %vm397_vm0, %v398_v1  ;;  %v280_v4 = vpack.c.bf16 %v62_v3, %v61_v2  ;;  %v283_v7 = vpack.c.bf16 %v148_v6, %v147_v5  ;;  %v60_v8 = vld [vmem:[#allocation2] sm:$0xff]  ;;  %v149_v9 = vld [vmem:[#allocation7 + $0x10] sm:$0xff]  ;;  %v150_v10 = vld [vmem:[#allocation7 + $0x18] sm:$0xff]  ;;  %s239_s8 = sshll.u32 %s399_s7, 4  ;;  %s240_s8 = int_to_ptr.vmem [resolvable:$true] %s239_s8 }
  0x39   :  { %v286_v11 = vpack.c.bf16 %v150_v10, %v149_v9  ;;  %v249_v12 = vld [vmem:[%s492_s2] ss:$0 sm:$0xff]  ;;  %s363_s2 = scalar_lea.vmem %s240_s8, 128  ;;  %p368_p11 = scmp.lt.s32.totalorder %s240_s8, %s240_s8 }
  0x3a   :  { %281 = vmatpush3.bf16.msra.mxu0 %v280_v4  ;;  %284 = vmatpush3.bf16.msra.mxu1 %v283_v7  ;;  %v251_v18 = vld [vmem:[%s494_s4] ss:$0 sm:$0xff]  ;;  %p364_p10 = scmp.ne.s32.totalorder %s240_s8, %s363_s2  ;;  %p369_p12 = scmp.lt.s32.totalorder %s363_s2, %s363_s2 }
  0x3b   :  { %285 = vmatprep.subr.bf16.mxu1 %v396_v0 }
  0x3c   :  { %p370_p13 = por %p369_p12, %p368_p11 }
  0x3d   :  { %266 = vmatmul.mubr.msk.f32.vlgmr.msra.gmra.mrb[0].mxu0 %vm70_vm1, %v60_v8 }
  0x3e   :  { %287 = vmatpush3.bf16.msra.mxu1 %v286_v11  ;;  %p371_p0 = pnand %p370_p13, %p364_p10 }
 0x110   :  { %v140_v13 = vpop.f32.mrb[0].mxu0 }
 0x111   :  { %v141_v14 = vadd.f32 %v249_v12, %v140_v13  ;;  %v267_v15 = vpop.f32.mrb[1].mxu0 }
 0x113   :  { %vm144_vm2 = vcmp.gt.f32.partialorder %v141_v14, 0.0  ;;  %v145_v16 = vmul.f32 0.01, %v141_v14 }
 0x115   :  { %v146_v17 = vsel %vm144_vm2, %v141_v14, %v145_v16 }
 0x116   :  { %277 = vmatmul.mubr.msk.f32.vlgmr.msra.gmra.mrb[0].mxu1 %vm158_vm3, %v146_v17 }
 0x1e9   :  { %v228_v19 = vpop.f32.mrb[0].mxu1 }
 0x1ea   :  { %v229_v20 = vadd.f32 %v251_v18, %v228_v19  ;;  %v278_v21 = vpop.f32.mrb[1].mxu1 }
 0x1ec   :  { %232 = vst [vmem:[#allocation8] sm:$0xff] %v229_v20 }
 0x1ed   :  { %374 = shalt.err (!%p371_p0)
}
 0x1ee   :  { %s375_s11 = scalar_lea.hbm %s495_s5, 128 }
 0x1ef   :  { %p376_p1 = scmp.ne.s32.totalorder %s495_s5, %s375_s11  ;;  %p379_p2 = scmp.lt.u32.totalorder %s375_s11, %s495_s5 }
 0x1f1   :  { %p381_p3 = pnand %p379_p2, %p376_p1 }
 0x1f3   :  { %384 = shalt.err (!%p381_p3)
}
 0x1f4   :  { %242 = dma.vmem_to_hbm [thread:$0]  %s240_s8, 128, %s495_s5, [#allocation4]  }
 0x1f5   :  { %389 = dma.done.wait [#allocation4], 128  }
 0x1f6   :  { %390 = vsyncadd [#allocation4], 4294967168 }
 0x1f7   :  { %246 = vsyncpa [#allocation3], 1 }
 0x1f8   :  { %247 = vsyncpa [#allocation6], 1 }
 0x1f9   :  { %248 = vsyncpa [#allocation4], 1 }

</bundles_post_ra>
